<compile_context>
chip_gen: v7x
topology: tpu7x:2x2x1
jax: 0.10.0
libtpu: 0.0.40
codegen_flags: <defaults>
</compile_context>

<pallas_src>
import functools

import jax
import jax.numpy as jnp
from jax.experimental import pallas as pl
from jax.experimental.pallas import tpu as pltpu

LANE = 128     # vreg lane width (last dim)
SUBLANE = 8    # vreg sublane width for f32 (second-to-last dim)


def _round_up(n, m):
    return ((n + m - 1) // m) * m


def _pad_to(a, target_shape):
    """Zero-pad array `a` up to `target_shape` (trailing pad only)."""
    pads = [(0, t - s) for s, t in zip(a.shape, target_shape)]
    if all(p == (0, 0) for p in pads):
        return a
    return jnp.pad(a, pads)


def _finetuned_kernel(x_ref, wb_ref, bb_ref, w1_ref, b1_ref, w2_ref, b2_ref, o_ref):
    # backbone: Linear(in -> E) + ReLU   (weights already (in, out): contracting dim last, no transpose)
    h = jnp.dot(x_ref[...], wb_ref[...], preferred_element_type=jnp.float32) + bb_ref[...]
    h = jnp.maximum(h, 0.0)
    # classifier[0]: Linear(E -> E//2)
    h1 = jnp.dot(h, w1_ref[...], preferred_element_type=jnp.float32) + b1_ref[...]
    # classifier[1]: Linear(E//2 -> num_classes)   (lane-padded output -> unmasked stores)
    out = jnp.dot(h1, w2_ref[...], preferred_element_type=jnp.float32) + b2_ref[...]
    o_ref[...] = out.astype(o_ref.dtype)


@functools.partial(jax.jit, static_argnames=("tile_b",))
def finetuned_forward(x, wb, bb, w1, b1, w2, b2, *, tile_b=256):
    """x: (B, in_dim) f32. Weights in PyTorch nn.Linear convention (out, in). Returns (B, num_classes)."""
    B, in_dim = x.shape
    emb = wb.shape[0]
    hid = w1.shape[0]
    nc = w2.shape[0]

    # ---- layout prep in the wrapper (one-time XLA ops, not per kernel step) ----
    # Pre-transpose weights: kernel computes x @ W with contracting dim last.
    wbt = wb.T   # (in_dim, emb)
    w1t = w1.T   # (emb,    hid)
    w2t = w2.T   # (hid,    nc)

    # Pad every feature dim to a multiple of 128 lanes (lane-dense matmuls + stores).
    in_p = _round_up(in_dim, LANE)
    emb_p = _round_up(emb, LANE)
    hid_p = _round_up(hid, LANE)
    nc_p = _round_up(nc, LANE)

    # Batch tile: multiple of the 8-row sublane; shrink for tiny batches so we don't over-pad.
    tb = min(tile_b, _round_up(B, SUBLANE))
    b_p = _round_up(B, tb)

    x_p = _pad_to(x, (b_p, in_p))
    wb_p = _pad_to(wbt, (in_p, emb_p))
    bb_p = _pad_to(bb.reshape(1, -1), (1, emb_p))
    w1_p = _pad_to(w1t, (emb_p, hid_p))
    b1_p = _pad_to(b1.reshape(1, -1), (1, hid_p))
    w2_p = _pad_to(w2t, (hid_p, nc_p))
    b2_p = _pad_to(b2.reshape(1, -1), (1, nc_p))

    grid = (b_p // tb,)

    out_padded = pl.pallas_call(
        _finetuned_kernel,
        out_shape=jax.ShapeDtypeStruct((b_p, nc_p), jnp.float32),
        grid=grid,
        in_specs=[
            # activations: tiled over batch
            pl.BlockSpec((tb, in_p), lambda i: (i, 0)),
            # weights / biases: constant block index -> resident in VMEM across grid steps
            pl.BlockSpec((in_p, emb_p), lambda i: (0, 0)),
            pl.BlockSpec((1, emb_p), lambda i: (0, 0)),
            pl.BlockSpec((emb_p, hid_p), lambda i: (0, 0)),
            pl.BlockSpec((1, hid_p), lambda i: (0, 0)),
            pl.BlockSpec((hid_p, nc_p), lambda i: (0, 0)),
            pl.BlockSpec((1, nc_p), lambda i: (0, 0)),
        ],
        out_specs=pl.BlockSpec((tb, nc_p), lambda i: (i, 0)),
        compiler_params=pltpu.CompilerParams(
            dimension_semantics=("parallel",),  # batch axis shards across TCs (v7x megacore)
        ),
    )(x_p, wb_p, bb_p, w1_p, b1_p, w2_p, b2_p)

    # Strip batch / class padding.
    return out_padded[:B, :nc]


def reference_forward(x, wb, bb, w1, b1, w2, b2):
    h = jnp.maximum(x @ wb.T + bb, 0.0)
    h1 = h @ w1.T + b1
    return h1 @ w2.T + b2


if __name__ == "__main__":
    # Small shapes consistent with the module
    batch = 8
    in_dim = 32          # backbone input features
    embedding_dim = 32   # backbone output / classifier input
    hidden = embedding_dim // 2
    num_classes = 8

    key = jax.random.PRNGKey(0)
    k_x, k_wb, k_bb, k_w1, k_b1, k_w2, k_b2 = jax.random.split(key, 7)

    x = jax.random.normal(k_x, (batch, in_dim), dtype=jnp.float32)

    # Deterministic parameter init (PyTorch nn.Linear weight convention: (out, in))
    wb = jax.random.normal(k_wb, (embedding_dim, in_dim), dtype=jnp.float32) * 0.1
    bb = jax.random.normal(k_bb, (embedding_dim,), dtype=jnp.float32) * 0.1
    w1 = jax.random.normal(k_w1, (hidden, embedding_dim), dtype=jnp.float32) * 0.1
    b1 = jax.random.normal(k_b1, (hidden,), dtype=jnp.float32) * 0.1
    w2 = jax.random.normal(k_w2, (num_classes, hidden), dtype=jnp.float32) * 0.1
    b2 = jax.random.normal(k_b2, (num_classes,), dtype=jnp.float32) * 0.1

    out = finetuned_forward(x, wb, bb, w1, b1, w2, b2)
    out = jax.block_until_ready(out)

    ref = reference_forward(x, wb, bb, w1, b1, w2, b2)
    assert out.shape == (batch, num_classes), out.shape
    assert jnp.allclose(out, ref, atol=1e-4, rtol=1e-4), "mismatch vs reference"

    print("KERNEL_OK")
</pallas_src>

<mosaic_0001>
module attributes {stable_mosaic.version = 11 : i64} {
  func.func @_finetuned_kernel(%arg0: i32, %arg1: memref<8x128xf32, #tpu.memory_space<vmem>>, %arg2: memref<128x128xf32, #tpu.memory_space<vmem>>, %arg3: memref<1x128xf32, #tpu.memory_space<vmem>>, %arg4: memref<128x128xf32, #tpu.memory_space<vmem>>, %arg5: memref<1x128xf32, #tpu.memory_space<vmem>>, %arg6: memref<128x128xf32, #tpu.memory_space<vmem>>, %arg7: memref<1x128xf32, #tpu.memory_space<vmem>>, %arg8: memref<8x128xf32, #tpu.memory_space<vmem>>) attributes {dimension_semantics = [#tpu.dimension_semantics<parallel>], iteration_bounds = array<i64: 1>, scalar_prefetch = 0 : i64, scratch_operands = 0 : i64, tpu.core_type = #tpu.core_type<tc>, window_params = [{transform_indices = @transform_0, window_bounds = array<i64: 8, 128>}, {pipeline_mode = #tpu.pipeline_mode<synchronous>, transform_indices = @transform_1, window_bounds = array<i64: 128, 128>}, {pipeline_mode = #tpu.pipeline_mode<synchronous>, transform_indices = @transform_2, window_bounds = array<i64: 1, 128>}, {pipeline_mode = #tpu.pipeline_mode<synchronous>, transform_indices = @transform_3, window_bounds = array<i64: 128, 128>}, {pipeline_mode = #tpu.pipeline_mode<synchronous>, transform_indices = @transform_4, window_bounds = array<i64: 1, 128>}, {pipeline_mode = #tpu.pipeline_mode<synchronous>, transform_indices = @transform_5, window_bounds = array<i64: 128, 128>}, {pipeline_mode = #tpu.pipeline_mode<synchronous>, transform_indices = @transform_6, window_bounds = array<i64: 1, 128>}, {transform_indices = @transform_7, window_bounds = array<i64: 8, 128>}]} {
    %c0 = arith.constant 0 : index
    %c0_0 = arith.constant 0 : index
    %0 = vector.load %arg1[%c0, %c0_0] : memref<8x128xf32, #tpu.memory_space<vmem>>, vector<8x128xf32>
    %c0_1 = arith.constant 0 : index
    %c0_2 = arith.constant 0 : index
    %1 = vector.load %arg2[%c0_1, %c0_2] : memref<128x128xf32, #tpu.memory_space<vmem>>, vector<128x128xf32>
    %cst = arith.constant dense<0.000000e+00> : vector<8x128xf32>
    %2 = tpu.matmul %0, %1, %cst {dimension_numbers = #tpu.dot_dimension_numbers<[1], [0], [0], [1], [0, 0, 1, 1], [], []>} : vector<8x128xf32>, vector<128x128xf32>, vector<8x128xf32> -> vector<8x128xf32>
    %c0_3 = arith.constant 0 : index
    %c0_4 = arith.constant 0 : index
    %3 = vector.load %arg3[%c0_3, %c0_4] : memref<1x128xf32, #tpu.memory_space<vmem>>, vector<1x128xf32>
    %4 = vector.broadcast %3 : vector<1x128xf32> to vector<8x128xf32>
    %5 = arith.addf %2, %4 : vector<8x128xf32>
    %cst_5 = arith.constant 0.000000e+00 : f32
    %6 = vector.broadcast %cst_5 : f32 to vector<8x128xf32>
    %7 = arith.maximumf %5, %6 : vector<8x128xf32>
    %c0_6 = arith.constant 0 : index
    %c0_7 = arith.constant 0 : index
    %8 = vector.load %arg4[%c0_6, %c0_7] : memref<128x128xf32, #tpu.memory_space<vmem>>, vector<128x128xf32>
    %cst_8 = arith.constant dense<0.000000e+00> : vector<8x128xf32>
    %9 = tpu.matmul %7, %8, %cst_8 {dimension_numbers = #tpu.dot_dimension_numbers<[1], [0], [0], [1], [0, 0, 1, 1], [], []>} : vector<8x128xf32>, vector<128x128xf32>, vector<8x128xf32> -> vector<8x128xf32>
    %c0_9 = arith.constant 0 : index
    %c0_10 = arith.constant 0 : index
    %10 = vector.load %arg5[%c0_9, %c0_10] : memref<1x128xf32, #tpu.memory_space<vmem>>, vector<1x128xf32>
    %11 = vector.broadcast %10 : vector<1x128xf32> to vector<8x128xf32>
    %12 = arith.addf %9, %11 : vector<8x128xf32>
    %c0_11 = arith.constant 0 : index
    %c0_12 = arith.constant 0 : index
    %13 = vector.load %arg6[%c0_11, %c0_12] : memref<128x128xf32, #tpu.memory_space<vmem>>, vector<128x128xf32>
    %cst_13 = arith.constant dense<0.000000e+00> : vector<8x128xf32>
    %14 = tpu.matmul %12, %13, %cst_13 {dimension_numbers = #tpu.dot_dimension_numbers<[1], [0], [0], [1], [0, 0, 1, 1], [], []>} : vector<8x128xf32>, vector<128x128xf32>, vector<8x128xf32> -> vector<8x128xf32>
    %c0_14 = arith.constant 0 : index
    %c0_15 = arith.constant 0 : index
    %15 = vector.load %arg7[%c0_14, %c0_15] : memref<1x128xf32, #tpu.memory_space<vmem>>, vector<1x128xf32>
    %16 = vector.broadcast %15 : vector<1x128xf32> to vector<8x128xf32>
    %17 = arith.addf %14, %16 : vector<8x128xf32>
    %c0_16 = arith.constant 0 : index
    %c0_17 = arith.constant 0 : index
    %18 = vector.load %arg8[%c0_16, %c0_17] : memref<8x128xf32, #tpu.memory_space<vmem>>, vector<8x128xf32>
    tpu.vector_store %arg8[%c0_16, %c0_17], %17 {strides = array<i32>} : memref<8x128xf32, #tpu.memory_space<vmem>>, vector<8x128xf32>,
    return
  }
  func.func @transform_0(%arg0: i32) -> (i32, i32) {
    %c0_i32 = arith.constant 0 : i32
    %c0_i32_0 = arith.constant 0 : i32
    return %arg0, %c0_i32 : i32, i32
  }
  func.func @transform_1(%arg0: i32) -> (i32, i32) {
    %c0_i32 = arith.constant 0 : i32
    %c0_i32_0 = arith.constant 0 : i32
    %c0_i32_1 = arith.constant 0 : i32
    return %c0_i32, %c0_i32_0 : i32, i32
  }
  func.func @transform_2(%arg0: i32) -> (i32, i32) {
    %c0_i32 = arith.constant 0 : i32
    %c0_i32_0 = arith.constant 0 : i32
    %c0_i32_1 = arith.constant 0 : i32
    return %c0_i32, %c0_i32_0 : i32, i32
  }
  func.func @transform_3(%arg0: i32) -> (i32, i32) {
    %c0_i32 = arith.constant 0 : i32
    %c0_i32_0 = arith.constant 0 : i32
    %c0_i32_1 = arith.constant 0 : i32
    return %c0_i32, %c0_i32_0 : i32, i32
  }
  func.func @transform_4(%arg0: i32) -> (i32, i32) {
    %c0_i32 = arith.constant 0 : i32
    %c0_i32_0 = arith.constant 0 : i32
    %c0_i32_1 = arith.constant 0 : i32
    return %c0_i32, %c0_i32_0 : i32, i32
  }
  func.func @transform_5(%arg0: i32) -> (i32, i32) {
    %c0_i32 = arith.constant 0 : i32
    %c0_i32_0 = arith.constant 0 : i32
    %c0_i32_1 = arith.constant 0 : i32
    return %c0_i32, %c0_i32_0 : i32, i32
  }
  func.func @transform_6(%arg0: i32) -> (i32, i32) {
    %c0_i32 = arith.constant 0 : i32
    %c0_i32_0 = arith.constant 0 : i32
    %c0_i32_1 = arith.constant 0 : i32
    return %c0_i32, %c0_i32_0 : i32, i32
  }
  func.func @transform_7(%arg0: i32) -> (i32, i32) {
    %c0_i32 = arith.constant 0 : i32
    %c0_i32_0 = arith.constant 0 : i32
    return %arg0, %c0_i32 : i32, i32
  }
}

</mosaic_0001>

<bundles_post_ra>
// kernel: finetuned_forward.1
= control target key start
LH: loop header
LB: loop body
LE: loop exit
PB: predicated region body
PF: predicated region fallthrough
CT: control target
= control target key end

     0   :  { %v582_v3 = vmov 0.0|0.0   ;;  %vm583_vm0 = vmmov 0   ;;  %v584_v6 = vmov 0.0   ;;  %s824_s0 = inlined_call_operand.vmem [shape: f32[8,128], index: 0, kind: input, shape index: {}]   ;;  %s825_s1 = inlined_call_operand.vmem [shape: f32[128,128], index: 1, kind: input, shape index: {}]   ;;  %s826_s2 = inlined_call_operand.vmem [shape: f32[1,128], index: 2, kind: input, shape index: {}]   ;;  %s827_s3 = inlined_call_operand.vmem [shape: f32[128,128], index: 3, kind: input, shape index: {}]   ;;  %s828_s4 = inlined_call_operand.vmem [shape: f32[1,128], index: 4, kind: input, shape index: {}]   ;;  %s829_s5 = inlined_call_operand.vmem [shape: f32[128,128], index: 5, kind: input, shape index: {}]   ;;  %s830_s6 = inlined_call_operand.vmem [shape: f32[1,128], index: 6, kind: input, shape index: {}]   ;;  %s831_s7 = inlined_call_operand.hbm [shape: f32[8,128], index: 7, kind: output, shape index: {}]  }
   0x1   :  { %v28_v0 = vld [vmem:[%s825_s1] sm:$0xff]  ;;  %v29_v1 = vld [vmem:[%s825_s1 + $0x8] sm:$0xff]  ;;  %v30_v2 = vld [vmem:[%s825_s1 + $0x10] sm:$0xff]  ;;  %482 = vmatprep.subr.bf16.mxu0 %v582_v3  ;;  %409 = vmatprep.mubr.msk.f32.mxu0 %vm583_vm0, %v584_v6 }
   0x2   :  { %v483_v4 = vpack.c.bf16 %v29_v1, %v28_v0  ;;  %v31_v5 = vld [vmem:[%s825_s1 + $0x18] sm:$0xff]  ;;  %506 = vmatprep.subr.bf16.mxu1 %v582_v3  ;;  %444 = vmatprep.mubr.msk.f32.mxu1 %vm583_vm0, %v584_v6  ;;  %v32_v8 = vld [vmem:[%s825_s1 + $0x20] sm:$0xff]  ;;  %v33_v9 = vld [vmem:[%s825_s1 + $0x28] sm:$0xff] }
   0x3   :  { %v486_v7 = vpack.c.bf16 %v31_v5, %v30_v2  ;;  %v122_v10 = vld [vmem:[%s827_s3] sm:$0xff]  ;;  %v123_v11 = vld [vmem:[%s827_s3 + $0x8] sm:$0xff]  ;;  %v124_v12 = vld [vmem:[%s827_s3 + $0x10] sm:$0xff]  ;;  %v489_v14 = vpack.c.bf16 %v33_v9, %v32_v8 }
   0x4   :  { %484 = vmatpush3.bf16.msra.mxu0 %v483_v4  ;;  %v125_v13 = vld [vmem:[%s827_s3 + $0x18] sm:$0xff]  ;;  %v507_v15 = vpack.c.bf16 %v123_v11, %v122_v10  ;;  %v34_v16 = vld [vmem:[%s825_s1 + $0x30] sm:$0xff]  ;;  %v126_v19 = vld [vmem:[%s827_s3 + $0x20] sm:$0xff] }
   0x5   :  { %485 = vmatprep.subr.bf16.mxu0 %v582_v3  ;;  %v35_v17 = vld [vmem:[%s825_s1 + $0x38] sm:$0xff]  ;;  %v510_v18 = vpack.c.bf16 %v125_v13, %v124_v12  ;;  %v127_v20 = vld [vmem:[%s827_s3 + $0x28] sm:$0xff] }
   0x6   :  { %508 = vmatpush3.bf16.msra.mxu1 %v507_v15 }
   0x7   :  { %509 = vmatprep.subr.bf16.mxu1 %v582_v3 }
   0x8   :  { %487 = vmatpush3.bf16.msra.mxu0 %v486_v7 }
   0x9   :  { %488 = vmatprep.subr.bf16.mxu0 %v582_v3 }
   0xa   :  { %12 = vsyncpa [#allocation3], 0  ;;  %v492_v21 = vpack.c.bf16 %v35_v17, %v34_v16  ;;  %v36_v22 = vld [vmem:[%s825_s1 + $0x40] sm:$0xff]  ;;  %v37_v23 = vld [vmem:[%s825_s1 + $0x48] sm:$0xff]  ;;  %511 = vmatpush3.bf16.msra.mxu1 %v510_v18  ;;  %v513_v24 = vpack.c.bf16 %v127_v20, %v126_v19  ;;  %s585_s29 = smov [#allocation2]  }
   0xb   :  { %512 = vmatprep.subr.bf16.mxu1 %v582_v3  ;;  %v128_v25 = vld [vmem:[%s827_s3 + $0x30] sm:$0xff]  ;;  %v129_v26 = vld [vmem:[%s827_s3 + $0x38] sm:$0xff]  ;;  %v495_v27 = vpack.c.bf16 %v37_v23, %v36_v22  ;;  %v130_v31 = vld [vmem:[%s827_s3 + $0x40] sm:$0xff]  ;;  %s315_s30 = sshll.u32 %s585_s29, 4  ;;  %s316_s30 = int_to_ptr.vmem [resolvable:$true] %s315_s30 }
   0xc   :  { %490 = vmatpush3.bf16.msra.mxu0 %v489_v14  ;;  %v38_v28 = vld [vmem:[%s825_s1 + $0x50] sm:$0xff]  ;;  %v39_v29 = vld [vmem:[%s825_s1 + $0x58] sm:$0xff]  ;;  %v516_v30 = vpack.c.bf16 %v129_v26, %v128_v25  ;;  %v131_v32 = vld [vmem:[%s827_s3 + $0x48] sm:$0xff]  ;;  %p563_p1 = scmp.lt.s32.totalorder %s316_s30, %s316_s30 }
   0xd   :  { %491 = vmatprep.subr.bf16.mxu0 %v582_v3  ;;  %v498_v33 = vpack.c.bf16 %v39_v29, %v38_v28  ;;  %v40_v34 = vld [vmem:[%s825_s1 + $0x60] sm:$0xff]  ;;  %v41_v35 = vld [vmem:[%s825_s1 + $0x68] sm:$0xff]  ;;  %v519_v36 = vpack.c.bf16 %v131_v32, %v130_v31  ;;  %v132_v37 = vld [vmem:[%s827_s3 + $0x50] sm:$0xff] }
   0xe   :  { %514 = vmatpush3.bf16.msra.mxu1 %v513_v24  ;;  %v133_v38 = vld [vmem:[%s827_s3 + $0x58] sm:$0xff]  ;;  %v501_v39 = vpack.c.bf16 %v41_v35, %v40_v34  ;;  %v42_v40 = vld [vmem:[%s825_s1 + $0x70] sm:$0xff]  ;;  %v134_v43 = vld [vmem:[%s827_s3 + $0x60] sm:$0xff] }
   0xf   :  { %515 = vmatprep.subr.bf16.mxu1 %v582_v3  ;;  %v43_v41 = vld [vmem:[%s825_s1 + $0x78] sm:$0xff]  ;;  %v522_v42 = vpack.c.bf16 %v133_v38, %v132_v37  ;;  %v135_v44 = vld [vmem:[%s827_s3 + $0x68] sm:$0xff]  ;;  %v27_v47 = vld [vmem:[%s824_s0] sm:$0xff] }
  0x10   :  { %493 = vmatpush3.bf16.msra.mxu0 %v492_v21  ;;  %v504_v45 = vpack.c.bf16 %v43_v41, %v42_v40  ;;  %v525_v46 = vpack.c.bf16 %v135_v44, %v134_v43  ;;  %v136_v48 = vld [vmem:[%s827_s3 + $0x70] sm:$0xff]  ;;  %v137_v49 = vld [vmem:[%s827_s3 + $0x78] sm:$0xff]  ;;  %v215_v51 = vld [vmem:[%s829_s5] sm:$0xff] }
  0x11   :  { %494 = vmatprep.subr.bf16.mxu0 %v582_v3  ;;  %v528_v50 = vpack.c.bf16 %v137_v49, %v136_v48  ;;  %v216_v52 = vld [vmem:[%s829_s5 + $0x8] sm:$0xff]  ;;  %v217_v53 = vld [vmem:[%s829_s5 + $0x10] sm:$0xff]  ;;  %v218_v55 = vld [vmem:[%s829_s5 + $0x18] sm:$0xff] }
  0x12   :  { %517 = vmatpush3.bf16.msra.mxu1 %v516_v30  ;;  %v531_v54 = vpack.c.bf16 %v216_v52, %v215_v51  ;;  %v534_v56 = vpack.c.bf16 %v218_v55, %v217_v53  ;;  %v219_v57 = vld [vmem:[%s829_s5 + $0x20] sm:$0xff]  ;;  %v220_v58 = vld [vmem:[%s829_s5 + $0x28] sm:$0xff]  ;;  %v221_v60 = vld [vmem:[%s829_s5 + $0x30] sm:$0xff] }
  0x13   :  { %518 = vmatprep.subr.bf16.mxu1 %v582_v3  ;;  %v537_v59 = vpack.c.bf16 %v220_v58, %v219_v57  ;;  %v222_v61 = vld [vmem:[%s829_s5 + $0x38] sm:$0xff]  ;;  %v223_v63 = vld [vmem:[%s829_s5 + $0x40] sm:$0xff]  ;;  %v224_v0 = vld [vmem:[%s829_s5 + $0x48] sm:$0xff] }
  0x14   :  { %496 = vmatpush3.bf16.msra.mxu0 %v495_v27  ;;  %v540_v62 = vpack.c.bf16 %v222_v61, %v221_v60  ;;  %v543_v1 = vpack.c.bf16 %v224_v0, %v223_v63  ;;  %v225_v2 = vld [vmem:[%s829_s5 + $0x50] sm:$0xff]  ;;  %v226_v4 = vld [vmem:[%s829_s5 + $0x58] sm:$0xff]  ;;  %v228_v7 = vld [vmem:[%s829_s5 + $0x68] sm:$0xff] }
  0x15   :  { %497 = vmatprep.subr.bf16.mxu0 %v582_v3  ;;  %v546_v5 = vpack.c.bf16 %v226_v4, %v225_v2  ;;  %v323_v9 = vld [vmem:[%s826_s2] ss:$0 sm:$0xff]  ;;  %v229_v14 = vld [vmem:[%s829_s5 + $0x70] sm:$0xff]  ;;  %v230_v15 = vld [vmem:[%s829_s5 + $0x78] sm:$0xff] }
  0x16   :  { %520 = vmatpush3.bf16.msra.mxu1 %v519_v36  ;;  %v552_v16 = vpack.c.bf16 %v230_v15, %v229_v14  ;;  %v325_v20 = vld [vmem:[%s830_s6] ss:$0 sm:$0xff] }
  0x17   :  { %521 = vmatprep.subr.bf16.mxu1 %v582_v3 }
  0x18   :  { %499 = vmatpush3.bf16.msra.mxu0 %v498_v33 }
  0x19   :  { %500 = vmatprep.subr.bf16.mxu0 %v582_v3 }
  0x1a   :  { %523 = vmatpush3.bf16.msra.mxu1 %v522_v42 }
  0x1b   :  { %524 = vmatprep.subr.bf16.mxu1 %v582_v3 }
  0x1c   :  { %502 = vmatpush3.bf16.msra.mxu0 %v501_v39 }
  0x1d   :  { %503 = vmatprep.subr.bf16.mxu0 %v582_v3 }
  0x1e   :  { %526 = vmatpush3.bf16.msra.mxu1 %v525_v46 }
  0x1f   :  { %527 = vmatprep.subr.bf16.mxu1 %v582_v3 }
  0x20   :  { %505 = vmatpush3.bf16.msra.mxu0 %v504_v45 }
  0x21   :  { %530 = vmatprep.subr.bf16.mxu0 %v582_v3 }
  0x22   :  { %529 = vmatpush3.bf16.msra.mxu1 %v528_v50 }
  0x23   :  { %410 = vmatmul.mubr.f32.vlgmr.msra.gmra.mrb[0].mxu0 %v27_v47 }
  0x24   :  { %479 = vmatprep.mubr.msk.f32.mxu0 %vm583_vm0, %v584_v6  ;;  %532 = vmatpush3.bf16.msra.mxu0 %v531_v54  ;;  %v227_v6 = vld [vmem:[%s829_s5 + $0x60] sm:$0xff]  ;;  %s558_s5 = scalar_lea.vmem %s316_s30, 128 }
  0x25   :  { %533 = vmatprep.subr.bf16.mxu0 %v582_v3  ;;  %v549_v8 = vpack.c.bf16 %v228_v7, %v227_v6  ;;  %p559_p0 = scmp.ne.s32.totalorder %s316_s30, %s558_s5  ;;  %p564_p2 = scmp.lt.s32.totalorder %s558_s5, %s558_s5 }
  0x27   :  { %p565_p3 = por %p564_p2, %p563_p1 }
  0x28   :  { %535 = vmatpush3.bf16.msra.mxu0 %v534_v56 }
  0x29   :  { %536 = vmatprep.subr.bf16.mxu0 %v582_v3  ;;  %p566_p4 = pnand %p565_p3, %p559_p0 }
  0x2c   :  { %538 = vmatpush3.bf16.msra.mxu0 %v537_v59 }
  0x2d   :  { %539 = vmatprep.subr.bf16.mxu0 %v582_v3 }
  0x30   :  { %541 = vmatpush3.bf16.msra.mxu0 %v540_v62 }
  0x31   :  { %542 = vmatprep.subr.bf16.mxu0 %v582_v3 }
  0x34   :  { %544 = vmatpush3.bf16.msra.mxu0 %v543_v1 }
  0x35   :  { %545 = vmatprep.subr.bf16.mxu0 %v582_v3 }
  0x38   :  { %547 = vmatpush3.bf16.msra.mxu0 %v546_v5 }
  0x39   :  { %548 = vmatprep.subr.bf16.mxu0 %v582_v3 }
  0x3c   :  { %550 = vmatpush3.bf16.msra.mxu0 %v549_v8 }
  0x3d   :  { %551 = vmatprep.subr.bf16.mxu0 %v582_v3  ;;  %v324_v3 = vld [vmem:[%s828_s4] ss:$0 sm:$0xff] }
  0x40   :  { %553 = vmatpush3.bf16.msra.mxu0 %v552_v16 }
  0xf6   :  { %v117_v10 = vpop.f32.mrb[0].mxu0 }
  0xf7   :  { %v118_v11 = vadd.f32 %v323_v9, %v117_v10  ;;  %v411_v12 = vpop.f32.mrb[1].mxu0 }
  0xf9   :  { %v121_v13 = vmax.f32 %v118_v11, 0.0 }
  0xfb   :  { %445 = vmatmul.mubr.f32.vlgmr.msra.gmra.mrb[0].mxu1 %v121_v13 }
 0x1ce   :  { %v211_v17 = vpop.f32.mrb[0].mxu1 }
 0x1cf   :  { %v212_v18 = vadd.f32 %v324_v3, %v211_v17  ;;  %v446_v19 = vpop.f32.mrb[1].mxu1 }
 0x1d1   :  { %480 = vmatmul.mubr.f32.vlgmr.msra.gmra.mrb[2].mxu0 %v212_v18 }
 0x2a4   :  { %v304_v21 = vpop.f32.mrb[2].mxu0 }
 0x2a5   :  { %v305_v22 = vadd.f32 %v325_v20, %v304_v21  ;;  %v481_v23 = vpop.f32.mrb[3].mxu0 }
 0x2a7   :  { %308 = vst [vmem:[#allocation2] sm:$0xff] %v305_v22 }
 0x2a8   :  { %569 = shalt.err (!%p566_p4)
}
 0x2a9   :  { %s570_s9 = scalar_lea.hbm %s831_s7, 128 }
 0x2aa   :  { %p571_p5 = scmp.ne.s32.totalorder %s831_s7, %s570_s9  ;;  %p574_p6 = scmp.lt.u32.totalorder %s570_s9, %s831_s7 }
 0x2ac   :  { %p576_p7 = pnand %p574_p6, %p571_p5 }
 0x2ae   :  { %579 = shalt.err (!%p576_p7)
}
 0x2af   :  { %318 = dma.vmem_to_hbm [thread:$0]  %s316_s30, 128, %s831_s7, [#allocation3]  }
 0x2b0   :  { %580 = dma.done.wait [#allocation3], 128  }
 0x2b1   :  { %581 = vsyncadd [#allocation3], 4294967168 }
 0x2b2   :  { %322 = vsyncpa [#allocation3], 1 }

</bundles_post_ra>
